<compile_context>
chip_gen: v5e
topology: v5e:2x2
jax: 0.10.0
libtpu: 0.0.40
codegen_flags: <defaults>
</compile_context>

<pallas_src>
import functools

import jax
import jax.numpy as jnp
from jax.experimental import pallas as pl
from jax.experimental.pallas import tpu as pltpu

EPS = 1e-6
LANES = 128
BASE_SUBLANES = 8            # f32 sublanes per vreg
TILE_CHUNKS = 1024           # 1024 chunks x 4 KiB/chunk = 4 MiB per input/block
VMEM_LIMIT_BYTES = 32 << 20  # 2 inputs x 2 buffers x 4 MiB + scratch, all gens


def _tensorcores_per_device() -> int:
    """2-way grid split only helps on multi-TensorCore devices (v7x)."""
    try:
        kind = jax.devices()[0].device_kind.lower()
    except Exception:
        return 1
    if "v7" in kind or "7x" in kind:
        return 2
    return 1


def _charbonnier_kernel(x_ref, y_ref, out_ref, acc_ref, *,
                        num_chunks, tile_chunks, blocks_per_split,
                        mask_possible):
    c = pl.program_id(0)          # split index ("parallel"; one per TC on v7x)
    i = pl.program_id(1)          # block index within split (reduction axis)

    @pl.when(i == 0)
    def _():
        acc_ref[...] = jnp.zeros_like(acc_ref)

    diff = x_ref[...].astype(jnp.float32) - y_ref[...].astype(jnp.float32)
    # sqrt goes to the EUP slot -> free filler in this HBM-bound kernel.
    err = jnp.sqrt(diff * diff + jnp.float32(EPS))

    if mask_possible:
        g = c * blocks_per_split + i                  # logical block index
        valid = num_chunks - g * tile_chunks          # #valid chunks this block

        # Full blocks skip the mask entirely (keeps VALU slots free).
        @pl.when(valid >= tile_chunks)
        def _():
            acc_ref[...] += jnp.sum(err, axis=0)

        # Tail / fully-clamped blocks: mask at chunk granularity. The select
        # stops NaN/Inf from stale VMEM garbage propagating; valid <= 0 zeroes
        # the whole contribution.
        @pl.when(valid < tile_chunks)
        def _():
            chunk_id = jax.lax.broadcasted_iota(jnp.int32, err.shape, 0)
            masked = jnp.where(chunk_id < valid, err, jnp.float32(0.0))
            acc_ref[...] += jnp.sum(masked, axis=0)
    else:
        acc_ref[...] += jnp.sum(err, axis=0)

    # Single cross-lane/sublane reduction + scalar store at the very end.
    @pl.when(i == pl.num_programs(1) - 1)
    def _():
        out_ref[0, 0] = jnp.sum(acc_ref[...])


def l1_charbonnier_loss(x, y):
    assert x.shape == y.shape
    n = x.size

    # Dense chunk packing: 8 sublanes for 4-byte dtypes, 16 for 2-byte,
    # 32 for 1-byte. One chunk is always one 4 KiB vreg worth of data.
    itemsize = max(jnp.dtype(x.dtype).itemsize, jnp.dtype(y.dtype).itemsize)
    sublanes = BASE_SUBLANES * max(1, 4 // int(itemsize))
    chunk = sublanes * LANES

    xf = x.reshape(-1)
    yf = y.reshape(-1)

    # Pad only when the flat size is not a multiple of one chunk.  Each padded
    # zero contributes exactly sqrt(EPS); corrected below.
    pad = (-n) % chunk
    if pad:
        xf = jnp.pad(xf, (0, pad))
        yf = jnp.pad(yf, (0, pad))
    num_chunks = (n + pad) // chunk

    xf = xf.reshape(num_chunks, sublanes, LANES)
    yf = yf.reshape(num_chunks, sublanes, LANES)

    tile_chunks = min(TILE_CHUNKS, num_chunks)
    blocks_total = pl.cdiv(num_chunks, tile_chunks)
    nsplit = _tensorcores_per_device() if blocks_total >= 2 else 1
    blocks_per_split = pl.cdiv(blocks_total, nsplit)
    # Mask only possible when the split/tiling does not cover num_chunks
    # exactly; even then, full blocks skip it at runtime.
    mask_possible = (nsplit * blocks_per_split * tile_chunks) != num_chunks
    last_block = blocks_total - 1

    def block_index(c, i):
        g = c * blocks_per_split + i
        if mask_possible:
            # Clamp so a fully out-of-range block re-reads a valid block
            # (its contribution is zeroed by the in-kernel mask).
            g = jnp.minimum(g, last_block)
        return (g, 0, 0)

    in_spec = pl.BlockSpec((tile_chunks, sublanes, LANES), block_index)

    kernel = functools.partial(
        _charbonnier_kernel,
        num_chunks=num_chunks,
        tile_chunks=tile_chunks,
        blocks_per_split=blocks_per_split,
        mask_possible=mask_possible,
    )

    cost = pl.CostEstimate(
        flops=5 * n,
        transcendentals=n,
        bytes_accessed=2 * (n + pad) * int(itemsize) + 4 * nsplit,
    )

    partials = pl.pallas_call(
        kernel,
        out_shape=jax.ShapeDtypeStruct((nsplit, 1), jnp.float32),
        grid_spec=pltpu.PrefetchScalarGridSpec(
            num_scalar_prefetch=0,
            grid=(nsplit, blocks_per_split),
            in_specs=[in_spec, in_spec],
            out_specs=pl.BlockSpec((1, 1), lambda c, i: (c, 0),
                                   memory_space=pltpu.SMEM),
            scratch_shapes=[pltpu.VMEM((sublanes, LANES), jnp.float32)],
        ),
        compiler_params=pltpu.CompilerParams(
            # TODO(synk): on v7x verify in a profile that the leading
            # "parallel" axis shards across both TensorCores; if not, switch
            # it to pltpu.CORE_PARALLEL.
            dimension_semantics=("parallel", "arbitrary"),
            vmem_limit_bytes=VMEM_LIMIT_BYTES,
        ),
        cost_estimate=cost,
    )(xf, yf)

    loss = jnp.sum(partials)
    if pad:
        # Each padded zero contributed exactly sqrt(EPS); remove that.
        loss = loss - jnp.float32(pad) * jnp.sqrt(jnp.float32(EPS))
    return loss


if __name__ == "__main__":
    key = jax.random.PRNGKey(0)
    kx, ky = jax.random.split(key)
    X = jax.random.normal(kx, (2, 4, 16, 16), dtype=jnp.float32)
    Y = jax.random.normal(ky, (2, 4, 16, 16), dtype=jnp.float32)

    loss = jax.block_until_ready(l1_charbonnier_loss(X, Y))

    # Reference check in plain JAX (matches the PyTorch module: sum form, eps).
    ref = jnp.sum(jnp.sqrt((X - Y) * (X - Y) + EPS))
    assert jnp.allclose(loss, ref, rtol=1e-5, atol=1e-5), (loss, ref)

    print("KERNEL_OK")
</pallas_src>

<mosaic_0001>
module attributes {stable_mosaic.version = 11 : i64} {
  func.func @_charbonnier_kernel(%arg0: i32, %arg1: i32, %arg2: memref<2x8x128xf32, #tpu.memory_space<vmem>>, %arg3: memref<2x8x128xf32, #tpu.memory_space<vmem>>, %arg4: memref<1x1xf32, #tpu.memory_space<smem>>, %arg5: memref<8x128xf32, #tpu.memory_space<vmem>>) attributes {dimension_semantics = [#tpu.dimension_semantics<parallel>, #tpu.dimension_semantics<arbitrary>], iteration_bounds = array<i64: 1, 1>, scalar_prefetch = 0 : i64, scratch_operands = 1 : i64, tpu.core_type = #tpu.core_type<tc>, window_params = [{transform_indices = @transform_0, window_bounds = array<i64: 2, 8, 128>}, {transform_indices = @transform_1, window_bounds = array<i64: 2, 8, 128>}, {transform_indices = @transform_2, window_bounds = array<i64: 1, 1>}]} {
    %c0_i32 = arith.constant 0 : i32
    %0 = arith.cmpi eq, %arg1, %c0_i32 : i32
    %1 = arith.extui %0 : i1 to i32
    %c0_i32_0 = arith.constant 0 : i32
    %2 = arith.cmpi ne, %1, %c0_i32_0 : i32
    scf.if %2 {
      %cst_13 = arith.constant 0.000000e+00 : f32
      %17 = vector.broadcast %cst_13 : f32 to vector<8x128xf32>
      %c0_14 = arith.constant 0 : index
      %c0_15 = arith.constant 0 : index
      %18 = vector.load %arg5[%c0_14, %c0_15] : memref<8x128xf32, #tpu.memory_space<vmem>>, vector<8x128xf32>
      tpu.vector_store %arg5[%c0_14, %c0_15], %17 {strides = array<i32>} : memref<8x128xf32, #tpu.memory_space<vmem>>, vector<8x128xf32>,
    } else {
    }
    %c0 = arith.constant 0 : index
    %c0_1 = arith.constant 0 : index
    %c0_2 = arith.constant 0 : index
    %3 = vector.load %arg2[%c0, %c0_1, %c0_2] : memref<2x8x128xf32, #tpu.memory_space<vmem>>, vector<2x8x128xf32>
    %c0_3 = arith.constant 0 : index
    %c0_4 = arith.constant 0 : index
    %c0_5 = arith.constant 0 : index
    %4 = vector.load %arg3[%c0_3, %c0_4, %c0_5] : memref<2x8x128xf32, #tpu.memory_space<vmem>>, vector<2x8x128xf32>
    %5 = arith.subf %3, %4 : vector<2x8x128xf32>
    %6 = arith.mulf %5, %5 : vector<2x8x128xf32>
    %cst = arith.constant 9.99999997E-7 : f32
    %7 = vector.broadcast %cst : f32 to vector<2x8x128xf32>
    %8 = arith.addf %6, %7 : vector<2x8x128xf32>
    %9 = math.sqrt %8 : vector<2x8x128xf32>
    %c0_6 = arith.constant 0 : index
    %c0_7 = arith.constant 0 : index
    %10 = vector.load %arg5[%c0_6, %c0_7] : memref<8x128xf32, #tpu.memory_space<vmem>>, vector<8x128xf32>
    %cst_8 = arith.constant dense<0.000000e+00> : vector<8x128xf32>
    %11 = vector.multi_reduction <add>, %9, %cst_8 [0] : vector<2x8x128xf32> to vector<8x128xf32>
    %12 = arith.addf %10, %11 : vector<8x128xf32>
    %c0_9 = arith.constant 0 : index
    %c0_10 = arith.constant 0 : index
    %13 = vector.load %arg5[%c0_9, %c0_10] : memref<8x128xf32, #tpu.memory_space<vmem>>, vector<8x128xf32>
    tpu.vector_store %arg5[%c0_9, %c0_10], %12 {strides = array<i32>} : memref<8x128xf32, #tpu.memory_space<vmem>>, vector<8x128xf32>,
    %c0_i32_11 = arith.constant 0 : i32
    %14 = arith.cmpi eq, %arg1, %c0_i32_11 : i32
    %15 = arith.extui %14 : i1 to i32
    %c0_i32_12 = arith.constant 0 : i32
    %16 = arith.cmpi ne, %15, %c0_i32_12 : i32
    scf.if %16 {
      %c0_13 = arith.constant 0 : index
      %c0_14 = arith.constant 0 : index
      %17 = vector.load %arg5[%c0_13, %c0_14] : memref<8x128xf32, #tpu.memory_space<vmem>>, vector<8x128xf32>
      %18 = vector.shape_cast %17 : vector<8x128xf32> to vector<1x8x128xf32>
      %cst_15 = arith.constant dense<0.000000e+00> : vector<1xf32>
      %19 = vector.multi_reduction <add>, %18, %cst_15 [1, 2] : vector<1x8x128xf32> to vector<1xf32>
      %20 = vector.shape_cast %19 : vector<1xf32> to vector<1x1x1xf32>
      %21 = vector.extract %20[0, 0, 0] : f32 from vector<1x1x1xf32>
      %c0_16 = arith.constant 0 : index
      %c0_17 = arith.constant 0 : index
      %22 = memref.load %arg4[%c0_16, %c0_17] : memref<1x1xf32, #tpu.memory_space<smem>>
      memref.store %21, %arg4[%c0_16, %c0_17] : memref<1x1xf32, #tpu.memory_space<smem>>
    } else {
    }
    return
  }
  func.func @transform_0(%arg0: i32, %arg1: i32) -> (i32, i32, i32) {
    %c1_i32 = arith.constant 1 : i32
    %0 = arith.muli %arg0, %c1_i32 : i32
    %1 = arith.addi %0, %arg1 : i32
    %c0_i32 = arith.constant 0 : i32
    %c0_i32_0 = arith.constant 0 : i32
    %c0_i32_1 = arith.constant 0 : i32
    return %1, %c0_i32, %c0_i32_0 : i32, i32, i32
  }
  func.func @transform_1(%arg0: i32, %arg1: i32) -> (i32, i32, i32) {
    %c1_i32 = arith.constant 1 : i32
    %0 = arith.muli %arg0, %c1_i32 : i32
    %1 = arith.addi %0, %arg1 : i32
    %c0_i32 = arith.constant 0 : i32
    %c0_i32_0 = arith.constant 0 : i32
    %c0_i32_1 = arith.constant 0 : i32
    return %1, %c0_i32, %c0_i32_0 : i32, i32, i32
  }
  func.func @transform_2(%arg0: i32, %arg1: i32) -> (i32, i32) {
    %c0_i32 = arith.constant 0 : i32
    %c0_i32_0 = arith.constant 0 : i32
    return %arg0, %c0_i32 : i32, i32
  }
}

</mosaic_0001>

<bundles_post_ra>
// kernel: tpu_custom_call.1
= control target key start
LH: loop header
LB: loop body
LE: loop exit
PB: predicated region body
PF: predicated region fallthrough
CT: control target
= control target key end

     0   :  { %7 = vsyncpa [#allocation4], 0  ;;  %s237_s0 = inlined_call_operand.hbm [shape: f32[2,8,128], index: 0, kind: input, shape index: {}]   ;;  %s238_s1 = inlined_call_operand.hbm [shape: f32[2,8,128], index: 1, kind: input, shape index: {}]   ;;  %s239_s2 = inlined_call_operand.hbm [shape: f32[1,1], index: 2, kind: output, shape index: {}]  }
   0x1   :  { %8 = vsyncpa [#allocation7], 0 }
   0x2   :  { %9 = vsyncpa [#allocation5], 0  ;;  %s18_s11 = sshll.u32 %s237_s0, 4  ;;  %s208_s12 = smov [#allocation3]   ;;  %s19_s11 = int_to_ptr.hbm [resolvable:$true] %s18_s11 }
   0x3   :  { %s20_s13 = sshll.u32 %s208_s12, 4  ;;  %s35_s16 = sshll.u32 %s238_s1, 4  ;;  %s21_s13 = int_to_ptr.vmem [resolvable:$true] %s20_s13  ;;  %s36_s16 = int_to_ptr.hbm [resolvable:$true] %s35_s16 }
   0x4   :  { %s209_s17 = smov 128   ;;  %s210_s18 = smov 8  }
   0x5   :  { %26 = dma.hbm_to_vmem [thread:$0]  %s19_s11, 256, %s21_s13, [#allocation4], %s209_s17, %s209_s17, %s210_s18  }
   0x6   :  { %s211_s19 = smov [#allocation6]  }
   0x7   :  { %s37_s20 = sshll.u32 %s211_s19, 4  ;;  %s38_s20 = int_to_ptr.vmem [resolvable:$true] %s37_s20 }
   0x8   :  { %43 = dma.hbm_to_vmem [thread:$0]  %s36_s16, 256, %s38_s20, [#allocation7], %s209_s17, %s209_s17, %s210_s18  }
   0x9   :  { %202 = dma.done.wait [#allocation4], 256  }
   0xa   :  { %203 = vsyncadd [#allocation4], 4294967040 }
   0xb   :  { %204 = dma.done.wait [#allocation7], 256  }
   0xc   :  { %205 = vsyncadd [#allocation7], 4294967040  ;;  %v61_v0 = vld [vmem:[#allocation3] sm:$0xff]  ;;  %v62_v1 = vld [vmem:[#allocation3 + $0x8] sm:$0xff]  ;;  %s119_s21 = sshll.u32 %s239_s2, 4  ;;  %s212_s23 = smov [#allocation8]   ;;  %s120_s21 = int_to_ptr.hbm [resolvable:$true] %s119_s21 }
   0xd   :  { %v63_v2 = vld [vmem:[#allocation6] sm:$0xff]  ;;  %v64_v3 = vld [vmem:[#allocation6 + $0x8] sm:$0xff] }
   0xe   :  { %v65_v4 = vsub.f32 %v61_v0, %v63_v2  ;;  %v66_v5 = vsub.f32 %v62_v1, %v64_v3 }
  0x10   :  { %v67_v6 = vmul.f32 %v65_v4, %v65_v4  ;;  %v68_v7 = vmul.f32 %v66_v5, %v66_v5 }
  0x12   :  { %v69_v8 = vadd.f32 1e-06, %v67_v6  ;;  %v70_v9 = vadd.f32 1e-06, %v68_v7 }
  0x14   :  { %138 = vrsqrt.f32 %v69_v8  ;;  %vm78_vm0 = vcmp.eq.f32.partialorder %v69_v8, inf  ;;  %v81_v21 = vand.u32 2147483648, %v69_v8  ;;  %vm80_vm1 = vcmp.eq.f32.partialorder %v69_v8, 0.0 }
  0x15   :  { %140 = vrsqrt.f32 %v70_v9  ;;  %vm90_vm2 = vcmp.eq.f32.partialorder %v70_v9, inf  ;;  %v93_v24 = vand.u32 2147483648, %v70_v9  ;;  %vm92_vm3 = vcmp.eq.f32.partialorder %v70_v9, 0.0 }
  0x1a   :  { %v139_v10 = vpop.eup %138 }
  0x1b   :  { %v141_v11 = vpop.eup %140  ;;  %v72_v12 = vmul.f32 %v139_v10, %v69_v8 }
  0x1c   :  { %v84_v13 = vmul.f32 %v141_v11, %v70_v9 }
  0x1d   :  { %v73_v14 = vmul.f32 %v139_v10, %v72_v12 }
  0x1e   :  { %v85_v15 = vmul.f32 %v141_v11, %v84_v13 }
  0x1f   :  { %v74_v16 = vmul.f32 0.5, %v73_v14 }
  0x20   :  { %v86_v17 = vmul.f32 0.5, %v85_v15 }
  0x21   :  { %v75_v18 = vsub.f32 1.5, %v74_v16 }
  0x22   :  { %v87_v19 = vsub.f32 1.5, %v86_v17 }
  0x23   :  { %v76_v20 = vmul.f32 %v139_v10, %v75_v18 }
  0x24   :  { %v88_v22 = vmul.f32 %v141_v11, %v87_v19 }
  0x25   :  { %v77_v23 = vmul.f32 %v76_v20, %v69_v8 }
  0x26   :  { %v89_v25 = vmul.f32 %v88_v22, %v70_v9 }
  0x27   :  { %v79_v26 = vsel %vm78_vm0, %v69_v8, %v77_v23 }
  0x28   :  { %v82_v27 = vsel %vm80_vm1, %v81_v21, %v79_v26  ;;  %v91_v28 = vsel %vm90_vm2, %v70_v9, %v89_v25 }
  0x29   :  { %v94_v29 = vsel %vm92_vm3, %v93_v24, %v91_v28 }
  0x2a   :  { %v96_v30 = vadd.f32 %v94_v29, %v82_v27 }
  0x2c   :  { %103 = vadd.xlane.f32.xlu0 %v96_v30 }
  0x9f   :  { %v104_v31 = vpop.xlane.xlu0 %103 }
  0xa0   :  { %v105_v32 = vrot.slane %v104_v31, 4 }
  0xa2   :  { %v106_v33 = vadd.f32 %v105_v32, %v104_v31 }
  0xa4   :  { %v107_v34 = vrot.slane %v106_v33, 2 }
  0xa6   :  { %v108_v35 = vadd.f32 %v107_v34, %v106_v33 }
  0xa8   :  { %v109_v36 = vrot.slane %v108_v35, 1 }
  0xaa   :  { %v110_v37 = vadd.f32 %v109_v36, %v108_v35 }
  0xac   :  { %131 = vpush %v110_v37 }
  0xdd   :  { %s132_s22 = spop %131 }
  0xde   :  { %113 = sst [smem:[#allocation8]] %s132_s22 }
  0xdf   :  { %122 = dma.smem_to_hbm %s212_s23, 16, %s120_s21, [#allocation5]  }
  0xe0   :  { %206 = dma.done.wait [#allocation5], 16  }
  0xe1   :  { %207 = vsyncadd [#allocation5], 4294967280 }
  0xe2   :  { %127 = sfence }
  0xe3   :  { %128 = vsyncpa [#allocation4], 1 }
  0xe4   :  { %129 = vsyncpa [#allocation7], 1 }
  0xe5   :  { %130 = vsyncpa [#allocation5], 1 }

</bundles_post_ra>
